<compile_context>
chip_gen: v7x
topology: tpu7x:2x2x1
jax: 0.10.0
libtpu: 0.0.40
codegen_flags: <defaults>
</compile_context>

<pallas_src>
import functools

import jax
import jax.numpy as jnp
from jax.experimental import pallas as pl
from jax.experimental.pallas import tpu as pltpu


def _round_up(n, m):
    return ((n + m - 1) // m) * m


def _pad2(a, shape):
    return jnp.pad(a, [(0, t - s) for s, t in zip(a.shape, shape)])


def dqn_kernel(x_ref, w1_ref, b1_ref, w2_ref, b2_ref, w3_ref, b3_ref, out_ref):
    # fc1 + relu (bf16 inputs, f32 accumulate)
    h1 = jnp.dot(x_ref[...], w1_ref[...], preferred_element_type=jnp.float32)
    h1 = jnp.maximum(h1 + b1_ref[...], 0.0).astype(jnp.bfloat16)
    # fc2 + relu
    h2 = jnp.dot(h1, w2_ref[...], preferred_element_type=jnp.float32)
    h2 = jnp.maximum(h2 + b2_ref[...], 0.0).astype(jnp.bfloat16)
    # fc3 (no activation), lane-dense 128-wide store
    out = jnp.dot(h2, w3_ref[...], preferred_element_type=jnp.float32)
    out_ref[...] = (out + b3_ref[...]).astype(out_ref.dtype)


def prepare_params(w1, b1, w2, b2, w3, b3):
    """Pad hidden/action dims to 128 lanes and cast weights to bf16 (do once)."""
    S, H = w1.shape
    A = w3.shape[1]
    Hp = _round_up(H, 128)
    Ap = _round_up(A, 128)
    w1p = _pad2(w1, (S, Hp)).astype(jnp.bfloat16)
    b1p = _pad2(b1.reshape(1, -1), (1, Hp)).astype(jnp.float32)
    w2p = _pad2(w2, (Hp, Hp)).astype(jnp.bfloat16)
    b2p = _pad2(b2.reshape(1, -1), (1, Hp)).astype(jnp.float32)
    w3p = _pad2(w3, (Hp, Ap)).astype(jnp.bfloat16)
    b3p = _pad2(b3.reshape(1, -1), (1, Ap)).astype(jnp.float32)
    return w1p, b1p, w2p, b2p, w3p, b3p


@functools.partial(jax.jit, static_argnames=("action_size", "tile_b"))
def dqn_forward(x, prepared, action_size, *, tile_b=512):
    w1p, b1p, w2p, b2p, w3p, b3p = prepared
    B, S = x.shape
    Ap = w3p.shape[1]

    # Batch tile: >=512 rows when the batch is big, else the (8-aligned) batch.
    tile_b = min(tile_b, _round_up(B, 8))
    B_pad = _round_up(B, tile_b)
    xp = x if B_pad == B else jnp.pad(x, ((0, B_pad - B), (0, 0)))
    xp = xp.astype(jnp.bfloat16)  # halve HBM traffic on the dominant input

    grid = (B_pad // tile_b,)
    out_padded = pl.pallas_call(
        dqn_kernel,
        out_shape=jax.ShapeDtypeStruct((B_pad, Ap), jnp.float32),
        grid=grid,
        in_specs=[
            pl.BlockSpec((tile_b, S), lambda i: (i, 0)),     # x: tiled over batch
            pl.BlockSpec(w1p.shape, lambda i: (0, 0)),        # weights/biases:
            pl.BlockSpec(b1p.shape, lambda i: (0, 0)),        # constant index maps
            pl.BlockSpec(w2p.shape, lambda i: (0, 0)),        # -> DMA'd once,
            pl.BlockSpec(b2p.shape, lambda i: (0, 0)),        #    VMEM-resident
            pl.BlockSpec(w3p.shape, lambda i: (0, 0)),
            pl.BlockSpec(b3p.shape, lambda i: (0, 0)),
        ],
        out_specs=pl.BlockSpec((tile_b, Ap), lambda i: (i, 0)),
        compiler_params=pltpu.CompilerParams(
            dimension_semantics=("parallel",),  # megacore sharding on v7x
        ),
    )(xp, w1p, b1p, w2p, b2p, w3p, b3p)

    return out_padded[:B, :action_size]


def init_params(key, state_size, action_size, hidden=64):
    # Deterministic init mimicking nn.Linear's U(-1/sqrt(fan_in), 1/sqrt(fan_in)).
    # Weights stored [in_features, out_features] (transposed vs. PyTorch).
    keys = jax.random.split(key, 6)

    def linear(kw, kb, fan_in, fan_out):
        bound = 1.0 / jnp.sqrt(fan_in)
        w = jax.random.uniform(kw, (fan_in, fan_out), jnp.float32, -bound, bound)
        b = jax.random.uniform(kb, (fan_out,), jnp.float32, -bound, bound)
        return w, b

    w1, b1 = linear(keys[0], keys[1], state_size, hidden)
    w2, b2 = linear(keys[2], keys[3], hidden, hidden)
    w3, b3 = linear(keys[4], keys[5], hidden, action_size)
    return w1, b1, w2, b2, w3, b3


if __name__ == "__main__":
    key = jax.random.PRNGKey(0)
    k_x, k_p = jax.random.split(key)

    batch = 1000          # not a tile multiple -> exercises pad + 2-step grid
    state_size = 8
    action_size = 4

    x = jax.random.normal(k_x, (batch, state_size), jnp.float32)
    params = init_params(k_p, state_size, action_size)
    prepared = prepare_params(*params)

    out = dqn_forward(x, prepared, action_size)
    out = jax.block_until_ready(out)
    assert out.shape == (batch, action_size)

    # Reference #1: mirrors the kernel's bf16-input / f32-accumulate math.
    w1, b1, w2, b2, w3, b3 = params

    def bf(a):
        return a.astype(jnp.bfloat16).astype(jnp.float32)

    h1 = jnp.maximum(bf(x) @ bf(w1) + b1, 0.0)
    h2 = jnp.maximum(bf(h1) @ bf(w2) + b2, 0.0)
    ref_bf16 = bf(h2) @ bf(w3) + b3
    assert jnp.allclose(out, ref_bf16, atol=2e-3, rtol=2e-3)

    # Reference #2: pure-f32 torch-equivalent math (loose tol for bf16 inputs).
    h1f = jnp.maximum(x @ w1 + b1, 0.0)
    h2f = jnp.maximum(h1f @ w2 + b2, 0.0)
    ref_f32 = h2f @ w3 + b3
    assert jnp.allclose(out, ref_f32, atol=5e-2, rtol=5e-2)

    print("KERNEL_OK")
</pallas_src>

<mosaic_0001>
module attributes {stable_mosaic.version = 11 : i64} {
  func.func @dqn_kernel(%arg0: i32, %arg1: memref<512x8xbf16, #tpu.memory_space<vmem>>, %arg2: memref<8x128xbf16, #tpu.memory_space<vmem>>, %arg3: memref<1x128xf32, #tpu.memory_space<vmem>>, %arg4: memref<128x128xbf16, #tpu.memory_space<vmem>>, %arg5: memref<1x128xf32, #tpu.memory_space<vmem>>, %arg6: memref<128x128xbf16, #tpu.memory_space<vmem>>, %arg7: memref<1x128xf32, #tpu.memory_space<vmem>>, %arg8: memref<512x128xf32, #tpu.memory_space<vmem>>) attributes {dimension_semantics = [#tpu.dimension_semantics<parallel>], iteration_bounds = array<i64: 2>, scalar_prefetch = 0 : i64, scratch_operands = 0 : i64, tpu.core_type = #tpu.core_type<tc>, window_params = [{transform_indices = @transform_0, window_bounds = array<i64: 512, 8>}, {pipeline_mode = #tpu.pipeline_mode<synchronous>, transform_indices = @transform_1, window_bounds = array<i64: 8, 128>}, {pipeline_mode = #tpu.pipeline_mode<synchronous>, transform_indices = @transform_2, window_bounds = array<i64: 1, 128>}, {pipeline_mode = #tpu.pipeline_mode<synchronous>, transform_indices = @transform_3, window_bounds = array<i64: 128, 128>}, {pipeline_mode = #tpu.pipeline_mode<synchronous>, transform_indices = @transform_4, window_bounds = array<i64: 1, 128>}, {pipeline_mode = #tpu.pipeline_mode<synchronous>, transform_indices = @transform_5, window_bounds = array<i64: 128, 128>}, {pipeline_mode = #tpu.pipeline_mode<synchronous>, transform_indices = @transform_6, window_bounds = array<i64: 1, 128>}, {transform_indices = @transform_7, window_bounds = array<i64: 512, 128>}]} {
    %c0 = arith.constant 0 : index
    %c0_0 = arith.constant 0 : index
    %0 = vector.load %arg1[%c0, %c0_0] : memref<512x8xbf16, #tpu.memory_space<vmem>>, vector<512x8xbf16>
    %c0_1 = arith.constant 0 : index
    %c0_2 = arith.constant 0 : index
    %1 = vector.load %arg2[%c0_1, %c0_2] : memref<8x128xbf16, #tpu.memory_space<vmem>>, vector<8x128xbf16>
    %cst = arith.constant dense<0.000000e+00> : vector<512x128xf32>
    %2 = tpu.matmul %0, %1, %cst {dimension_numbers = #tpu.dot_dimension_numbers<[1], [0], [0], [1], [0, 0, 1, 1], [], []>} : vector<512x8xbf16>, vector<8x128xbf16>, vector<512x128xf32> -> vector<512x128xf32>
    %c0_3 = arith.constant 0 : index
    %c0_4 = arith.constant 0 : index
    %3 = vector.load %arg3[%c0_3, %c0_4] : memref<1x128xf32, #tpu.memory_space<vmem>>, vector<1x128xf32>
    %4 = vector.broadcast %3 : vector<1x128xf32> to vector<512x128xf32>
    %5 = arith.addf %2, %4 : vector<512x128xf32>
    %cst_5 = arith.constant 0.000000e+00 : f32
    %6 = vector.broadcast %cst_5 : f32 to vector<512x128xf32>
    %7 = arith.maximumf %5, %6 : vector<512x128xf32>
    %8 = arith.truncf %7 : vector<512x128xf32> to vector<512x128xbf16>
    %c0_6 = arith.constant 0 : index
    %c0_7 = arith.constant 0 : index
    %9 = vector.load %arg4[%c0_6, %c0_7] : memref<128x128xbf16, #tpu.memory_space<vmem>>, vector<128x128xbf16>
    %cst_8 = arith.constant dense<0.000000e+00> : vector<512x128xf32>
    %10 = tpu.matmul %8, %9, %cst_8 {dimension_numbers = #tpu.dot_dimension_numbers<[1], [0], [0], [1], [0, 0, 1, 1], [], []>} : vector<512x128xbf16>, vector<128x128xbf16>, vector<512x128xf32> -> vector<512x128xf32>
    %c0_9 = arith.constant 0 : index
    %c0_10 = arith.constant 0 : index
    %11 = vector.load %arg5[%c0_9, %c0_10] : memref<1x128xf32, #tpu.memory_space<vmem>>, vector<1x128xf32>
    %12 = vector.broadcast %11 : vector<1x128xf32> to vector<512x128xf32>
    %13 = arith.addf %10, %12 : vector<512x128xf32>
    %cst_11 = arith.constant 0.000000e+00 : f32
    %14 = vector.broadcast %cst_11 : f32 to vector<512x128xf32>
    %15 = arith.maximumf %13, %14 : vector<512x128xf32>
    %16 = arith.truncf %15 : vector<512x128xf32> to vector<512x128xbf16>
    %c0_12 = arith.constant 0 : index
    %c0_13 = arith.constant 0 : index
    %17 = vector.load %arg6[%c0_12, %c0_13] : memref<128x128xbf16, #tpu.memory_space<vmem>>, vector<128x128xbf16>
    %cst_14 = arith.constant dense<0.000000e+00> : vector<512x128xf32>
    %18 = tpu.matmul %16, %17, %cst_14 {dimension_numbers = #tpu.dot_dimension_numbers<[1], [0], [0], [1], [0, 0, 1, 1], [], []>} : vector<512x128xbf16>, vector<128x128xbf16>, vector<512x128xf32> -> vector<512x128xf32>
    %c0_15 = arith.constant 0 : index
    %c0_16 = arith.constant 0 : index
    %19 = vector.load %arg7[%c0_15, %c0_16] : memref<1x128xf32, #tpu.memory_space<vmem>>, vector<1x128xf32>
    %20 = vector.broadcast %19 : vector<1x128xf32> to vector<512x128xf32>
    %21 = arith.addf %18, %20 : vector<512x128xf32>
    %c0_17 = arith.constant 0 : index
    %c0_18 = arith.constant 0 : index
    %22 = vector.load %arg8[%c0_17, %c0_18] : memref<512x128xf32, #tpu.memory_space<vmem>>, vector<512x128xf32>
    tpu.vector_store %arg8[%c0_17, %c0_18], %21 {strides = array<i32>} : memref<512x128xf32, #tpu.memory_space<vmem>>, vector<512x128xf32>,
    return
  }
  func.func @transform_0(%arg0: i32) -> (i32, i32) {
    %c0_i32 = arith.constant 0 : i32
    %c0_i32_0 = arith.constant 0 : i32
    return %arg0, %c0_i32 : i32, i32
  }
  func.func @transform_1(%arg0: i32) -> (i32, i32) {
    %c0_i32 = arith.constant 0 : i32
    %c0_i32_0 = arith.constant 0 : i32
    %c0_i32_1 = arith.constant 0 : i32
    return %c0_i32, %c0_i32_0 : i32, i32
  }
  func.func @transform_2(%arg0: i32) -> (i32, i32) {
    %c0_i32 = arith.constant 0 : i32
    %c0_i32_0 = arith.constant 0 : i32
    %c0_i32_1 = arith.constant 0 : i32
    return %c0_i32, %c0_i32_0 : i32, i32
  }
  func.func @transform_3(%arg0: i32) -> (i32, i32) {
    %c0_i32 = arith.constant 0 : i32
    %c0_i32_0 = arith.constant 0 : i32
    %c0_i32_1 = arith.constant 0 : i32
    return %c0_i32, %c0_i32_0 : i32, i32
  }
  func.func @transform_4(%arg0: i32) -> (i32, i32) {
    %c0_i32 = arith.constant 0 : i32
    %c0_i32_0 = arith.constant 0 : i32
    %c0_i32_1 = arith.constant 0 : i32
    return %c0_i32, %c0_i32_0 : i32, i32
  }
  func.func @transform_5(%arg0: i32) -> (i32, i32) {
    %c0_i32 = arith.constant 0 : i32
    %c0_i32_0 = arith.constant 0 : i32
    %c0_i32_1 = arith.constant 0 : i32
    return %c0_i32, %c0_i32_0 : i32, i32
  }
  func.func @transform_6(%arg0: i32) -> (i32, i32) {
    %c0_i32 = arith.constant 0 : i32
    %c0_i32_0 = arith.constant 0 : i32
    %c0_i32_1 = arith.constant 0 : i32
    return %c0_i32, %c0_i32_0 : i32, i32
  }
  func.func @transform_7(%arg0: i32) -> (i32, i32) {
    %c0_i32 = arith.constant 0 : i32
    %c0_i32_0 = arith.constant 0 : i32
    return %arg0, %c0_i32 : i32, i32
  }
}

</mosaic_0001>

<bundles_post_ra>
// kernel: dqn_forward.1
= control target key start
LH: loop header
LB: loop body
LE: loop exit
PB: predicated region body
PF: predicated region fallthrough
CT: control target
= control target key end

     0   :  { %s2478_s24 = smov 0   ;;  %s2919_s0 = inlined_call_operand.vmem [shape: bf16[1024,8], index: 0, kind: input, shape index: {}]   ;;  %s2920_s1 = inlined_call_operand.vmem [shape: bf16[8,128], index: 1, kind: input, shape index: {}]   ;;  %s2921_s2 = inlined_call_operand.vmem [shape: f32[1,128], index: 2, kind: input, shape index: {}]   ;;  %s2922_s3 = inlined_call_operand.vmem [shape: bf16[128,128], index: 3, kind: input, shape index: {}]   ;;  %s2923_s4 = inlined_call_operand.vmem [shape: f32[1,128], index: 4, kind: input, shape index: {}]   ;;  %s2924_s5 = inlined_call_operand.vmem [shape: bf16[128,128], index: 5, kind: input, shape index: {}]   ;;  %s2925_s6 = inlined_call_operand.vmem [shape: f32[1,128], index: 6, kind: input, shape index: {}]   ;;  %s2926_s7 = inlined_call_operand.vmem [shape: f32[1024,128], index: 7, kind: output, shape index: {}]  }
   0x1 LB: > { %s1937_s25 = sadd.s32 4294967295, %s2436_s24   ;;  %p1941_p0 = scmp.ge.s32.totalorder %s2436_s24, 1  ;;  %s2436_s24 = sphi %s2478_s24, %s17_s24  }
   0x2   : > { %p238_p1 = scmp.lt.s32.totalorder %s2436_s24, 3 }
   0x4   : > { %p239_p2 = pnand %p1941_p0, %p238_p1 }
   0x5   : > { %v347_v0 = vld [vmem:[%s2920_s1] sm:$0xf] (!%p239_p2)  ;;  %vm612_vm0 = vcmask (!%p239_p2), 1043456   ;;  %s1942_s28 = sshll.u32 (!%p239_p2), %s1937_s25, 6  ;;  %vm515_vm1 = vcmask (!%p239_p2), 64512   ;;  %v2415_v11 = vld [vmem:[%s2922_s3 + $0x8] sm:$0xff] (!%p239_p2)  }
   0x6   : > { %242 = sbr.rel (%p239_p2) target bundleno = 800 (0x320), region = 48  ;;  %v2414_v1 = vld [vmem:[%s2922_s3] sm:$0xff] (!%p239_p2)   ;;  %2372 = vmatprep.subr.msk.bf16.mxu0 (!%p239_p2), %vm612_vm0, %v347_v0  ;;  %v614_v2 = vsel (!%p239_p2), %vm612_vm0, %v347_v0, 0  ;;  %p271_p3 = scmp.lt.s32.totalorder (!%p239_p2), %s1942_s28, 127  ;;  %2373 = vmatprep.subr.msk.bf16.mxu1 (!%p239_p2), %vm612_vm0, %v347_v0  ;;  %v2416_v14 = vld [vmem:[%s2922_s3 + $0x10] sm:$0xff] (!%p239_p2)   ;;  %v2417_v19 = vld [vmem:[%s2922_s3 + $0x18] sm:$0xff] (!%p239_p2)  }
   0x7   : > { %2145 = vmatpush3.bf16.msra.mxu0 (!%p239_p2), %v614_v2  ;;  %2371 = vmatpush3.bf16.msra.mxu1 (!%p239_p2), %v614_v2  ;;  %v2418_v20 = vld [vmem:[%s2922_s3 + $0x20] sm:$0xff] (!%p239_p2)   ;;  %v2419_v25 = vld [vmem:[%s2922_s3 + $0x28] sm:$0xff] (!%p239_p2)   ;;  %v2420_v26 = vld [vmem:[%s2922_s3 + $0x30] sm:$0xff] (!%p239_p2)  }
   0x8   : > { %2210 = vmatprep.subr.bf16.mxu1 (!%p239_p2), %v2414_v1  ;;  %v2421_v41 = vld [vmem:[%s2922_s3 + $0x38] sm:$0xff] (!%p239_p2)   ;;  %v2588_v42 = vld [vmem:[%s2921_s2] ss:$0 sm:$0xff] (!%p239_p2)  ;;  %v2423_v51 = vld [vmem:[%s2924_s5 + $0x8] sm:$0xff] (!%p239_p2)  }
   0x9   : > { %v2422_v50 = vld [vmem:[%s2924_s5] sm:$0xff] (!%p239_p2)   ;;  %v2424_v58 = vld [vmem:[%s2924_s5 + $0x10] sm:$0xff] (!%p239_p2)  }
   0xa   : > { %2290 = vmatprep.subr.bf16.mxu0 (!%p239_p2), %v2422_v50 }
   0xd   : > { %s2928_s28 = smov (!%p271_p3, %s1942_s28), 127 }
   0xe   : > { %s1943_s8 = sshll.u32 %s2928_s28, 2  ;;  %s1945_s26 = sshll.u32 %s2928_s28, 3 }
   0xf   : > { %s2498_s11 = scalar_lea.vmem %s2919_s0, %s1943_s8  ;;  %s2786_s9 = scalar_lea.vmem %s2926_s7, %s1945_s26 }
  0x10   : > { %v2382_v3 = vld [vmem:[%s2498_s11] sm:$0xff]   ;;  %v2383_v4 = vld [vmem:[%s2498_s11 + $0x8] sm:$0xff]   ;;  %v2384_v5 = vld [vmem:[%s2498_s11 + $0x10] sm:$0xff]  }
  0x11   : > { %2146 = vmatprep.mubr.msk.bf16.mxu0 %vm515_vm1, %v2382_v3  ;;  %v2385_v6 = vld [vmem:[%s2498_s11 + $0x18] sm:$0xff]   ;;  %v2386_v7 = vld [vmem:[%s2498_s11 + $0x20] sm:$0xff]   ;;  %v2387_v8 = vld [vmem:[%s2498_s11 + $0x28] sm:$0xff]  }
  0x12   : > { %2147 = vmatmul.mubr.msk.bf16.vlgmr.msra.gmra.mrb[0].mxu0 %vm515_vm1, %v2383_v4  ;;  %v2388_v9 = vld [vmem:[%s2498_s11 + $0x30] sm:$0xff]   ;;  %v2398_v10 = vld [vmem:[%s2498_s11 + $0x80] sm:$0xff]   ;;  %v2399_v12 = vld [vmem:[%s2498_s11 + $0x88] sm:$0xff]  }
  0x13   : > { %2150 = vmatprep.mubr.msk.bf16.mxu0 %vm515_vm1, %v2384_v5  ;;  %2178 = vmatprep.mubr.msk.bf16.mxu1 %vm515_vm1, %v2398_v10  ;;  %v2400_v13 = vld [vmem:[%s2498_s11 + $0x90] sm:$0xff]   ;;  %v2389_v15 = vld [vmem:[%s2498_s11 + $0x38] sm:$0xff]   ;;  %v2390_v16 = vld [vmem:[%s2498_s11 + $0x40] sm:$0xff]  }
  0x14   : > { %2179 = vmatmul.mubr.msk.bf16.vlgmr.msra.gmra.mrb[0].mxu1 %vm515_vm1, %v2399_v12  ;;  %v2401_v17 = vld [vmem:[%s2498_s11 + $0x98] sm:$0xff]   ;;  %v2402_v18 = vld [vmem:[%s2498_s11 + $0xa0] sm:$0xff]   ;;  %v2391_v21 = vld [vmem:[%s2498_s11 + $0x48] sm:$0xff]   ;;  %2291 = vmatpush3.bf16.msra.mxu0 %v2422_v50 }
  0x15   : > { %2182 = vmatprep.mubr.msk.bf16.mxu1 %vm515_vm1, %v2400_v13  ;;  %2211 = vmatpush3.bf16.msra.mxu1 %v2414_v1  ;;  %v2392_v22 = vld [vmem:[%s2498_s11 + $0x50] sm:$0xff]   ;;  %v2403_v23 = vld [vmem:[%s2498_s11 + $0xa8] sm:$0xff]   ;;  %v2393_v27 = vld [vmem:[%s2498_s11 + $0x58] sm:$0xff]  }
  0x16   : > { %2212 = vmatprep.subr.bf16.mxu1 %v2415_v11  ;;  %v2404_v24 = vld [vmem:[%s2498_s11 + $0xb0] sm:$0xff]   ;;  %v2405_v28 = vld [vmem:[%s2498_s11 + $0xb8] sm:$0xff]   ;;  %v2394_v29 = vld [vmem:[%s2498_s11 + $0x60] sm:$0xff]   ;;  %2292 = vmatprep.subr.bf16.mxu0 %v2423_v51 }
  0x17   : > { %v2406_v30 = vld [vmem:[%s2498_s11 + $0xc0] sm:$0xff]   ;;  %v2395_v31 = vld [vmem:[%s2498_s11 + $0x68] sm:$0xff]   ;;  %v2396_v33 = vld [vmem:[%s2498_s11 + $0x70] sm:$0xff]  }
  0x18   : > { %v2407_v32 = vld [vmem:[%s2498_s11 + $0xc8] sm:$0xff]   ;;  %v2408_v34 = vld [vmem:[%s2498_s11 + $0xd0] sm:$0xff]   ;;  %v2397_v35 = vld [vmem:[%s2498_s11 + $0x78] sm:$0xff]   ;;  %2293 = vmatpush3.bf16.msra.mxu0 %v2423_v51 }
  0x19   : > { %2213 = vmatpush3.bf16.msra.mxu1 %v2415_v11  ;;  %v2409_v36 = vld [vmem:[%s2498_s11 + $0xd8] sm:$0xff]   ;;  %v2410_v37 = vld [vmem:[%s2498_s11 + $0xe0] sm:$0xff]   ;;  %v2411_v38 = vld [vmem:[%s2498_s11 + $0xe8] sm:$0xff]   ;;  %2294 = vmatprep.subr.bf16.mxu0 %v2424_v58 }
  0x1a   : > { %2151 = vmatmul.mubr.msk.bf16.gmra.mrb[4].mxu0 %vm515_vm1, %v2385_v6  ;;  %2214 = vmatprep.subr.bf16.mxu1 %v2416_v14  ;;  %v2412_v39 = vld [vmem:[%s2498_s11 + $0xf0] sm:$0xff]   ;;  %v2413_v40 = vld [vmem:[%s2498_s11 + $0xf8] sm:$0xff]   ;;  %v2426_v10 = vld [vmem:[%s2924_s5 + $0x20] sm:$0xff]  }
  0x1b   : > { %2154 = vmatprep.mubr.msk.bf16.mxu0 %vm515_vm1, %v2386_v7  ;;  %v2425_v3 = vld [vmem:[%s2924_s5 + $0x18] sm:$0xff]  }
  0x1c   : > { %2183 = vmatmul.mubr.msk.bf16.gmra.mrb[4].mxu1 %vm515_vm1, %v2401_v17  ;;  %2295 = vmatpush3.bf16.msra.mxu0 %v2424_v58 }
  0x1d   : > { %2186 = vmatprep.mubr.msk.bf16.mxu1 %vm515_vm1, %v2402_v18  ;;  %2215 = vmatpush3.bf16.msra.mxu1 %v2416_v14 }
  0x1e   : > { %2216 = vmatprep.subr.bf16.mxu1 %v2417_v19  ;;  %2296 = vmatprep.subr.bf16.mxu0 %v2425_v3 }
  0x20   : > { %2297 = vmatpush3.bf16.msra.mxu0 %v2425_v3 }
  0x21   : > { %2217 = vmatpush3.bf16.msra.mxu1 %v2417_v19  ;;  %2298 = vmatprep.subr.bf16.mxu0 %v2426_v10 }
  0x22   : > { %2155 = vmatmul.mubr.msk.bf16.gmra.mrb[8].mxu0 %vm515_vm1, %v2387_v8  ;;  %2218 = vmatprep.subr.bf16.mxu1 %v2418_v20 }
  0x23   : > { %2158 = vmatprep.mubr.msk.bf16.mxu0 %vm515_vm1, %v2388_v9 }
  0x24   : > { %2187 = vmatmul.mubr.msk.bf16.gmra.mrb[8].mxu1 %vm515_vm1, %v2403_v23  ;;  %2299 = vmatpush3.bf16.msra.mxu0 %v2426_v10 }
  0x25   : > { %2190 = vmatprep.mubr.msk.bf16.mxu1 %vm515_vm1, %v2404_v24  ;;  %2219 = vmatpush3.bf16.msra.mxu1 %v2418_v20 }
  0x26   : > { %2220 = vmatprep.subr.bf16.mxu1 %v2419_v25 }
  0x29   : > { %2221 = vmatpush3.bf16.msra.mxu1 %v2419_v25 }
  0x2a   : > { %2159 = vmatmul.mubr.msk.bf16.gmra.mrb[12].mxu0 %vm515_vm1, %v2389_v15  ;;  %2222 = vmatprep.subr.bf16.mxu1 %v2420_v26 }
  0x2b   : > { %2162 = vmatprep.mubr.msk.bf16.mxu0 %vm515_vm1, %v2390_v16 }
  0x2c   : > { %2191 = vmatmul.mubr.msk.bf16.gmra.mrb[12].mxu1 %vm515_vm1, %v2405_v28 }
  0x2d   : > { %2194 = vmatprep.mubr.msk.bf16.mxu1 %vm515_vm1, %v2406_v30  ;;  %2223 = vmatpush3.bf16.msra.mxu1 %v2420_v26 }
  0x2e   : > { %2224 = vmatprep.subr.bf16.mxu1 %v2421_v41 }
  0x31   : > { %2225 = vmatpush3.bf16.msra.mxu1 %v2421_v41 }
  0x32   : > { %2163 = vmatmul.mubr.msk.bf16.gmra.mrb[16].mxu0 %vm515_vm1, %v2391_v21 }
  0x33   : > { %2166 = vmatprep.mubr.msk.bf16.mxu0 %vm515_vm1, %v2392_v22 }
  0x34   : > { %2195 = vmatmul.mubr.msk.bf16.gmra.mrb[16].mxu1 %vm515_vm1, %v2407_v32 }
  0x35   : > { %2198 = vmatprep.mubr.msk.bf16.mxu1 %vm515_vm1, %v2408_v34 }
  0x3a   : > { %2167 = vmatmul.mubr.msk.bf16.gmra.mrb[20].mxu0 %vm515_vm1, %v2393_v27  ;;  %v2427_v27 = vld [vmem:[%s2924_s5 + $0x28] sm:$0xff]  }
  0x3b   : > { %2170 = vmatprep.mubr.msk.bf16.mxu0 %vm515_vm1, %v2394_v29  ;;  %2300 = vmatprep.subr.bf16.mxu0 %v2427_v27 }
  0x3c   : > { %2199 = vmatmul.mubr.msk.bf16.gmra.mrb[20].mxu1 %vm515_vm1, %v2409_v36  ;;  %2301 = vmatpush3.bf16.msra.mxu0 %v2427_v27 }
  0x3d   : > { %2202 = vmatprep.mubr.msk.bf16.mxu1 %vm515_vm1, %v2410_v37 }
  0x42   : > { %2171 = vmatmul.mubr.msk.bf16.gmra.mrb[24].mxu0 %vm515_vm1, %v2395_v31 }
  0x43   : > { %2174 = vmatprep.mubr.msk.bf16.mxu0 %vm515_vm1, %v2396_v33 }
  0x44   : > { %2203 = vmatmul.mubr.msk.bf16.gmra.mrb[24].mxu1 %vm515_vm1, %v2411_v38 }
  0x45   : > { %2206 = vmatprep.mubr.msk.bf16.mxu1 %vm515_vm1, %v2412_v39  ;;  %v2428_v39 = vld [vmem:[%s2924_s5 + $0x30] sm:$0xff]  }
  0x46   : > { %2302 = vmatprep.subr.bf16.mxu0 %v2428_v39 }
  0x47   : > { %2303 = vmatpush3.bf16.msra.mxu0 %v2428_v39 }
  0x4a   : > { %2175 = vmatmul.mubr.msk.bf16.gmra.mrb[28].mxu0 %vm515_vm1, %v2397_v35 }
  0x4c   : > { %2207 = vmatmul.mubr.msk.bf16.gmra.mrb[28].mxu1 %vm515_vm1, %v2413_v40 }
  0xe5   : > { %v2148_v43 = vpop.f32.mrb[0].mxu0 }
  0xe6   : > { %v659_v44 = vadd.f32 %v2148_v43, %v2588_v42  ;;  %v650_v45 = vpop.f32.mrb[1].mxu0 }
  0xe7   : > { %v651_v46 = vadd.f32 %v2588_v42, %v650_v45  ;;  %v2149_v47 = vpop.f32.mrb[2].mxu0  ;;  %v2180_v13 = vpop.f32.mrb[0].mxu1 }
  0xe8   : > { %v662_v48 = vadd.f32 %v2149_v47, %v2588_v42  ;;  %v653_v49 = vpop.f32.mrb[3].mxu0  ;;  %v907_v53 = vmax.f32 %v659_v44, 0.0  ;;  %v787_v16 = vadd.f32 %v2180_v13, %v2588_v42  ;;  %v778_v17 = vpop.f32.mrb[1].mxu1 }
  0xe9   : > { %v654_v52 = vadd.f32 %v2588_v42, %v653_v49  ;;  %v905_v55 = vmax.f32 %v651_v46, 0.0  ;;  %v779_v20 = vadd.f32 %v2588_v42, %v778_v17  ;;  %v2181_v21 = vpop.f32.mrb[2].mxu1 }
  0xea   : > { %v908_v54 = vmax.f32 %v662_v48, 0.0  ;;  %v939_v24 = vmax.f32 %v787_v16, 0.0  ;;  %v790_v25 = vadd.f32 %v2181_v21, %v2588_v42  ;;  %v781_v26 = vpop.f32.mrb[3].mxu1 }
  0xeb   : > { %v906_v56 = vmax.f32 %v654_v52, 0.0  ;;  %v937_v29 = vmax.f32 %v779_v20, 0.0  ;;  %v782_v30 = vadd.f32 %v2588_v42, %v781_v26 }
  0xec   : > { %v970_v57 = vpack.c.bf16 %v908_v54, %v907_v53  ;;  %v940_v33 = vmax.f32 %v790_v25, 0.0 }
  0xed   : > { %v969_v59 = vpack.c.bf16 %v906_v56, %v905_v55  ;;  %v2152_v60 = vpop.f32.mrb[4].mxu0  ;;  %v938_v36 = vmax.f32 %v782_v30, 0.0 }
  0xee   : > { %v675_v61 = vadd.f32 %v2152_v60, %v2588_v42  ;;  %v666_v62 = vpop.f32.mrb[5].mxu0  ;;  %v2624_v38 = vpack.c.bf16 %v940_v33, %v939_v24 }
  0xef   : > { %v667_v63 = vadd.f32 %v2588_v42, %v666_v62  ;;  %v2153_v0 = vpop.f32.mrb[6].mxu0  ;;  %2226 = vmatprep.mubr.bf16.mxu1 %v969_v59  ;;  %v2629_v43 = vpack.c.bf16 %v938_v36, %v937_v29  ;;  %v2184_v44 = vpop.f32.mrb[4].mxu1 }
  0xf0   : > { %v678_v1 = vadd.f32 %v2153_v0, %v2588_v42  ;;  %v669_v2 = vpop.f32.mrb[7].mxu0  ;;  %2227 = vmatmul.mubr.bf16.vlgmr.msra.gmra.mrb[32].mxu1 %v970_v57  ;;  %v911_v5 = vmax.f32 %v675_v61, 0.0  ;;  %v803_v47 = vadd.f32 %v2184_v44, %v2588_v42  ;;  %v794_v48 = vpop.f32.mrb[5].mxu1 }
  0xf1   : > { %v670_v4 = vadd.f32 %v2588_v42, %v669_v2  ;;  %v909_v7 = vmax.f32 %v667_v63, 0.0  ;;  %v795_v51 = vadd.f32 %v2588_v42, %v794_v48  ;;  %v2185_v52 = vpop.f32.mrb[6].mxu1 }
  0xf2   : > { %v912_v6 = vmax.f32 %v678_v1, 0.0  ;;  %v943_v55 = vmax.f32 %v803_v47, 0.0  ;;  %v806_v56 = vadd.f32 %v2185_v52, %v2588_v42  ;;  %v797_v57 = vpop.f32.mrb[7].mxu1 }
  0xf3   : > { %v910_v8 = vmax.f32 %v670_v4, 0.0  ;;  %v941_v59 = vmax.f32 %v795_v51, 0.0  ;;  %v798_v60 = vadd.f32 %v2588_v42, %v797_v57 }
  0xf4   : > { %v972_v9 = vpack.c.bf16 %v912_v6, %v911_v5  ;;  %v944_v63 = vmax.f32 %v806_v56, 0.0 }
  0xf5   : > { %v971_v11 = vpack.c.bf16 %v910_v8, %v909_v7  ;;  %v2156_v12 = vpop.f32.mrb[8].mxu0  ;;  %v942_v2 = vmax.f32 %v798_v60, 0.0 }
  0xf6   : > { %v691_v14 = vadd.f32 %v2156_v12, %v2588_v42  ;;  %v682_v15 = vpop.f32.mrb[9].mxu0  ;;  %v2639_v4 = vpack.c.bf16 %v944_v63, %v943_v55 }
  0xf7   : > { %v683_v18 = vadd.f32 %v2588_v42, %v682_v15  ;;  %v2157_v19 = vpop.f32.mrb[10].mxu0  ;;  %2230 = vmatprep.mubr.bf16.mxu1 %v971_v11  ;;  %v2641_v7 = vpack.c.bf16 %v942_v2, %v941_v59  ;;  %v2188_v8 = vpop.f32.mrb[8].mxu1 }
  0xf8   : > { %v694_v22 = vadd.f32 %v2157_v19, %v2588_v42  ;;  %v685_v23 = vpop.f32.mrb[11].mxu0  ;;  %2231 = vmatmul.mubr.bf16.gmra.mrb[36].mxu1 %v972_v9  ;;  %v915_v31 = vmax.f32 %v691_v14, 0.0  ;;  %v819_v11 = vadd.f32 %v2188_v8, %v2588_v42  ;;  %v810_v12 = vpop.f32.mrb[9].mxu1 }
  0xf9   : > { %v686_v28 = vadd.f32 %v2588_v42, %v685_v23  ;;  %v913_v34 = vmax.f32 %v683_v18, 0.0  ;;  %v811_v15 = vadd.f32 %v2588_v42, %v810_v12  ;;  %v2189_v16 = vpop.f32.mrb[10].mxu1 }
  0xfa   : > { %v916_v32 = vmax.f32 %v694_v22, 0.0  ;;  %v947_v19 = vmax.f32 %v819_v11, 0.0  ;;  %v822_v20 = vadd.f32 %v2189_v16, %v2588_v42  ;;  %v813_v21 = vpop.f32.mrb[11].mxu1 }
  0xfb   : > { %v914_v35 = vmax.f32 %v686_v28, 0.0  ;;  %v945_v23 = vmax.f32 %v811_v15, 0.0  ;;  %v814_v24 = vadd.f32 %v2588_v42, %v813_v21 }
  0xfc   : > { %v974_v37 = vpack.c.bf16 %v916_v32, %v915_v31  ;;  %v948_v27 = vmax.f32 %v822_v20, 0.0 }
  0xfd   : > { %v973_v40 = vpack.c.bf16 %v914_v35, %v913_v34  ;;  %v2160_v41 = vpop.f32.mrb[12].mxu0  ;;  %v946_v30 = vmax.f32 %v814_v24, 0.0 }
  0xfe   : > { %v707_v45 = vadd.f32 %v2160_v41, %v2588_v42  ;;  %v698_v46 = vpop.f32.mrb[13].mxu0  ;;  %v2651_v32 = vpack.c.bf16 %v948_v27, %v947_v19 }
  0xff   : > { %v699_v49 = vadd.f32 %v2588_v42, %v698_v46  ;;  %v2161_v50 = vpop.f32.mrb[14].mxu0  ;;  %2234 = vmatprep.mubr.bf16.mxu1 %v973_v40  ;;  %v2653_v35 = vpack.c.bf16 %v946_v30, %v945_v23  ;;  %v2192_v36 = vpop.f32.mrb[12].mxu1 }
 0x100   : > { %v710_v53 = vadd.f32 %v2161_v50, %v2588_v42  ;;  %v701_v54 = vpop.f32.mrb[15].mxu0  ;;  %2235 = vmatmul.mubr.bf16.gmra.mrb[40].mxu1 %v974_v37  ;;  %v919_v61 = vmax.f32 %v707_v45, 0.0  ;;  %v835_v40 = vadd.f32 %v2192_v36, %v2588_v42  ;;  %v826_v41 = vpop.f32.mrb[13].mxu1 }
 0x101   : > { %v702_v58 = vadd.f32 %v2588_v42, %v701_v54  ;;  %v917_v0 = vmax.f32 %v699_v49, 0.0  ;;  %v827_v46 = vadd.f32 %v2588_v42, %v826_v41  ;;  %v2193_v47 = vpop.f32.mrb[14].mxu1 }
 0x102   : > { %v920_v62 = vmax.f32 %v710_v53, 0.0  ;;  %v951_v50 = vmax.f32 %v835_v40, 0.0  ;;  %v838_v51 = vadd.f32 %v2193_v47, %v2588_v42  ;;  %v829_v52 = vpop.f32.mrb[15].mxu1 }
 0x103   : > { %v918_v1 = vmax.f32 %v702_v58, 0.0  ;;  %v949_v54 = vmax.f32 %v827_v46, 0.0  ;;  %v830_v55 = vadd.f32 %v2588_v42, %v829_v52 }
 0x104   : > { %v976_v3 = vpack.c.bf16 %v920_v62, %v919_v61  ;;  %v952_v58 = vmax.f32 %v838_v51, 0.0 }
 0x105   : > { %v975_v5 = vpack.c.bf16 %v918_v1, %v917_v0  ;;  %v2164_v6 = vpop.f32.mrb[16].mxu0  ;;  %v950_v61 = vmax.f32 %v830_v55, 0.0 }
 0x106   : > { %v723_v9 = vadd.f32 %v2164_v6, %v2588_v42  ;;  %v714_v10 = vpop.f32.mrb[17].mxu0  ;;  %v2663_v63 = vpack.c.bf16 %v952_v58, %v951_v50 }
 0x107   : > { %v715_v13 = vadd.f32 %v2588_v42, %v714_v10  ;;  %v2165_v14 = vpop.f32.mrb[18].mxu0  ;;  %2238 = vmatprep.mubr.bf16.mxu1 %v975_v5  ;;  %v2665_v2 = vpack.c.bf16 %v950_v61, %v949_v54 }
 0x108   : > { %v726_v17 = vadd.f32 %v2165_v14, %v2588_v42  ;;  %v717_v18 = vpop.f32.mrb[19].mxu0  ;;  %2239 = vmatmul.mubr.bf16.gmra.mrb[44].mxu1 %v976_v3  ;;  %v923_v25 = vmax.f32 %v723_v9, 0.0  ;;  %v2196_v3 = vpop.f32.mrb[16].mxu1 }
 0x109   : > { %v718_v22 = vadd.f32 %v2588_v42, %v717_v18  ;;  %v921_v28 = vmax.f32 %v715_v13, 0.0  ;;  %v851_v8 = vadd.f32 %v2196_v3, %v2588_v42  ;;  %v842_v9 = vpop.f32.mrb[17].mxu1 }
 0x10a   : > { %v924_v26 = vmax.f32 %v726_v17, 0.0  ;;  %v843_v12 = vadd.f32 %v2588_v42, %v842_v9  ;;  %v2197_v13 = vpop.f32.mrb[18].mxu1 }
 0x10b   : > { %v922_v29 = vmax.f32 %v718_v22, 0.0  ;;  %v955_v16 = vmax.f32 %v851_v8, 0.0  ;;  %v854_v17 = vadd.f32 %v2197_v13, %v2588_v42  ;;  %v845_v18 = vpop.f32.mrb[19].mxu1 }
 0x10c   : > { %v978_v31 = vpack.c.bf16 %v924_v26, %v923_v25  ;;  %v953_v20 = vmax.f32 %v843_v12, 0.0  ;;  %v846_v21 = vadd.f32 %v2588_v42, %v845_v18 }
 0x10d   : > { %v977_v33 = vpack.c.bf16 %v922_v29, %v921_v28  ;;  %v2168_v34 = vpop.f32.mrb[20].mxu0  ;;  %v956_v24 = vmax.f32 %v854_v17, 0.0 }
 0x10e   : > { %v739_v37 = vadd.f32 %v2168_v34, %v2588_v42  ;;  %v730_v39 = vpop.f32.mrb[21].mxu0  ;;  %v954_v27 = vmax.f32 %v846_v21, 0.0 }
 0x10f   : > { %v731_v44 = vadd.f32 %v2588_v42, %v730_v39  ;;  %v2169_v45 = vpop.f32.mrb[22].mxu0  ;;  %2242 = vmatprep.mubr.bf16.mxu1 %v977_v33  ;;  %v2675_v29 = vpack.c.bf16 %v956_v24, %v955_v16  ;;  %v2200_v34 = vpop.f32.mrb[20].mxu1 }
 0x110   : > { %v742_v48 = vadd.f32 %v2169_v45, %v2588_v42  ;;  %v733_v49 = vpop.f32.mrb[23].mxu0  ;;  %2243 = vmatmul.mubr.bf16.gmra.mrb[48].mxu1 %v978_v31  ;;  %v927_v56 = vmax.f32 %v739_v37, 0.0  ;;  %v2677_v33 = vpack.c.bf16 %v954_v27, %v953_v20  ;;  %v867_v39 = vadd.f32 %v2200_v34, %v2588_v42  ;;  %v858_v40 = vpop.f32.mrb[21].mxu1 }
 0x111   : > { %v734_v53 = vadd.f32 %v2588_v42, %v733_v49  ;;  %v925_v59 = vmax.f32 %v731_v44, 0.0  ;;  %v859_v45 = vadd.f32 %v2588_v42, %v858_v40  ;;  %v2201_v46 = vpop.f32.mrb[22].mxu1 }
 0x112   : > { %v928_v57 = vmax.f32 %v742_v48, 0.0  ;;  %v959_v49 = vmax.f32 %v867_v39, 0.0  ;;  %v870_v50 = vadd.f32 %v2201_v46, %v2588_v42  ;;  %v861_v51 = vpop.f32.mrb[23].mxu1 }
 0x113   : > { %v926_v60 = vmax.f32 %v734_v53, 0.0  ;;  %v957_v53 = vmax.f32 %v859_v45, 0.0  ;;  %v862_v54 = vadd.f32 %v2588_v42, %v861_v51 }
 0x114   : > { %v980_v62 = vpack.c.bf16 %v928_v57, %v927_v56  ;;  %v960_v57 = vmax.f32 %v870_v50, 0.0 }
 0x115   : > { %v979_v0 = vpack.c.bf16 %v926_v60, %v925_v59  ;;  %v2172_v1 = vpop.f32.mrb[24].mxu0  ;;  %v958_v60 = vmax.f32 %v862_v54, 0.0 }
 0x116   : > { %v755_v5 = vadd.f32 %v2172_v1, %v2588_v42  ;;  %v746_v6 = vpop.f32.mrb[25].mxu0 }
 0x117   : > { %v747_v10 = vadd.f32 %v2588_v42, %v746_v6  ;;  %v2173_v11 = vpop.f32.mrb[26].mxu0  ;;  %2246 = vmatprep.mubr.bf16.mxu1 %v979_v0  ;;  %v995_v1 = vpack.c.bf16 %v958_v60, %v957_v53  ;;  %v2204_v3 = vpop.f32.mrb[24].mxu1 }
 0x118   : > { %v758_v14 = vadd.f32 %v2173_v11, %v2588_v42  ;;  %v749_v15 = vpop.f32.mrb[27].mxu0  ;;  %2247 = vmatmul.mubr.bf16.gmra.mrb[52].mxu1 %v980_v62  ;;  %v931_v22 = vmax.f32 %v755_v5, 0.0  ;;  %v996_v62 = vpack.c.bf16 %v960_v57, %v959_v49  ;;  %v883_v5 = vadd.f32 %v2204_v3, %v2588_v42  ;;  %v874_v6 = vpop.f32.mrb[25].mxu1 }
 0x119   : > { %v750_v19 = vadd.f32 %v2588_v42, %v749_v15  ;;  %v929_v25 = vmax.f32 %v747_v10, 0.0  ;;  %v875_v8 = vadd.f32 %v2588_v42, %v874_v6  ;;  %v2205_v9 = vpop.f32.mrb[26].mxu1 }
 0x11a   : > { %v932_v23 = vmax.f32 %v758_v14, 0.0  ;;  %v963_v10 = vmax.f32 %v883_v5, 0.0  ;;  %v886_v11 = vadd.f32 %v2205_v9, %v2588_v42  ;;  %v877_v12 = vpop.f32.mrb[27].mxu1 }
 0x11b   : > { %v930_v26 = vmax.f32 %v750_v19, 0.0  ;;  %v961_v13 = vmax.f32 %v875_v8, 0.0  ;;  %v878_v14 = vadd.f32 %v2588_v42, %v877_v12 }
 0x11c   : > { %v982_v28 = vpack.c.bf16 %v932_v23, %v931_v22  ;;  %v964_v15 = vmax.f32 %v886_v11, 0.0 }
 0x11d   : > { %v981_v30 = vpack.c.bf16 %v930_v26, %v929_v25  ;;  %v2176_v31 = vpop.f32.mrb[28].mxu0  ;;  %v962_v16 = vmax.f32 %v878_v14, 0.0 }
 0x11e   : > { %v771_v36 = vadd.f32 %v2176_v31, %v2588_v42  ;;  %v762_v37 = vpop.f32.mrb[29].mxu0  ;;  %v998_v17 = vpack.c.bf16 %v964_v15, %v963_v10 }
 0x11f   : > { %v763_v41 = vadd.f32 %v2588_v42, %v762_v37  ;;  %v2177_v44 = vpop.f32.mrb[30].mxu0  ;;  %2250 = vmatprep.mubr.bf16.mxu1 %v981_v30  ;;  %v997_v18 = vpack.c.bf16 %v962_v16, %v961_v13  ;;  %v2208_v19 = vpop.f32.mrb[28].mxu1 }
 0x120   : > { %v774_v47 = vadd.f32 %v2177_v44, %v2588_v42  ;;  %v765_v48 = vpop.f32.mrb[31].mxu0  ;;  %2251 = vmatmul.mubr.bf16.gmra.mrb[56].mxu1 %v982_v28  ;;  %v935_v55 = vmax.f32 %v771_v36, 0.0  ;;  %v899_v20 = vadd.f32 %v2208_v19, %v2588_v42  ;;  %v890_v21 = vpop.f32.mrb[29].mxu1 }
 0x121   : > { %v766_v52 = vadd.f32 %v2588_v42, %v765_v48  ;;  %v933_v58 = vmax.f32 %v763_v41, 0.0  ;;  %v891_v22 = vadd.f32 %v2588_v42, %v890_v21  ;;  %v2209_v23 = vpop.f32.mrb[30].mxu1 }
 0x122   : > { %v936_v56 = vmax.f32 %v774_v47, 0.0  ;;  %v967_v24 = vmax.f32 %v899_v20, 0.0  ;;  %v902_v25 = vadd.f32 %v2209_v23, %v2588_v42 }
 0x123   : > { %v934_v59 = vmax.f32 %v766_v52, 0.0  ;;  %v965_v26 = vmax.f32 %v891_v22, 0.0 }
 0x124   : > { %v984_v61 = vpack.c.bf16 %v936_v56, %v935_v55  ;;  %v968_v28 = vmax.f32 %v902_v25, 0.0 }
 0x125   : > { %v983_v0 = vpack.c.bf16 %v934_v59, %v933_v58 }
 0x126   : > { %v1000_v31 = vpack.c.bf16 %v968_v28, %v967_v24 }
 0x127   : > { %2254 = vmatprep.mubr.bf16.mxu1 %v983_v0 }
 0x128   : > { %2255 = vmatmul.mubr.bf16.gmra.mrb[60].mxu1 %v984_v61 }
 0x129   : > { %2258 = vmatprep.mubr.bf16.mxu1 %v2629_v43  ;;  %v893_v43 = vpop.f32.mrb[31].mxu1 }
 0x12a   : > { %v894_v27 = vadd.f32 %v2588_v42, %v893_v43  ;;  %v2711_v42 = vld [vmem:[%s2923_s4] ss:$0 sm:$0xff] }
 0x12c   : > { %v966_v30 = vmax.f32 %v894_v27, 0.0 }
 0x12e   : > { %v999_v34 = vpack.c.bf16 %v966_v30, %v965_v26 }
 0x130   : > { %2259 = vmatmul.mubr.bf16.gmra.mrb[64].mxu1 %v2624_v38  ;;  %v2429_v38 = vld [vmem:[%s2924_s5 + $0x38] sm:$0xff]  }
 0x131   : > { %2262 = vmatprep.mubr.bf16.mxu1 %v2641_v7  ;;  %2304 = vmatprep.subr.bf16.mxu0 %v2429_v38 }
 0x132   : > { %2305 = vmatpush3.bf16.msra.mxu0 %v2429_v38 }
 0x138   : > { %2263 = vmatmul.mubr.bf16.gmra.mrb[68].mxu1 %v2639_v4 }
 0x139   : > { %2266 = vmatprep.mubr.bf16.mxu1 %v2653_v35 }
 0x140   : > { %2267 = vmatmul.mubr.bf16.gmra.mrb[72].mxu1 %v2651_v32 }
 0x141   : > { %2270 = vmatprep.mubr.bf16.mxu1 %v2665_v2 }
 0x148   : > { %2271 = vmatmul.mubr.bf16.gmra.mrb[76].mxu1 %v2663_v63 }
 0x149   : > { %2274 = vmatprep.mubr.bf16.mxu1 %v2677_v33 }
 0x150   : > { %2275 = vmatmul.mubr.bf16.gmra.mrb[80].mxu1 %v2675_v29 }
 0x151   : > { %2278 = vmatprep.mubr.bf16.mxu1 %v995_v1 }
 0x158   : > { %2279 = vmatmul.mubr.bf16.gmra.mrb[84].mxu1 %v996_v62 }
 0x159   : > { %2282 = vmatprep.mubr.bf16.mxu1 %v997_v18 }
 0x160   : > { %2283 = vmatmul.mubr.bf16.gmra.mrb[88].mxu1 %v998_v17 }
 0x161   : > { %2286 = vmatprep.mubr.bf16.mxu1 %v999_v34 }
 0x168   : > { %2287 = vmatmul.mubr.bf16.gmra.mrb[92].mxu1 %v1000_v31 }
 0x1c3   : > { %v2228_v4 = vpop.f32.mrb[32].mxu1 }
 0x1c4   : > { %v1115_v7 = vadd.f32 %v2228_v4, %v2711_v42  ;;  %v1106_v32 = vpop.f32.mrb[33].mxu1 }
 0x1c5   : > { %v1107_v35 = vadd.f32 %v2711_v42, %v1106_v32  ;;  %v2229_v63 = vpop.f32.mrb[34].mxu1 }
 0x1c6   : > { %v1118_v2 = vadd.f32 %v2229_v63, %v2711_v42  ;;  %v1109_v29 = vpop.f32.mrb[35].mxu1  ;;  %v1363_v36 = vmax.f32 %v1115_v7, 0.0 }
 0x1c7   : > { %v1110_v33 = vadd.f32 %v2711_v42, %v1109_v29  ;;  %v1361_v39 = vmax.f32 %v1107_v35, 0.0 }
 0x1c8   : > { %v1364_v37 = vmax.f32 %v1118_v2, 0.0 }
 0x1c9   : > { %v1362_v40 = vmax.f32 %v1110_v33, 0.0 }
 0x1ca   : > { %v1426_v41 = vpack.c.bf16 %v1364_v37, %v1363_v36 }
 0x1cb   : > { %v1425_v44 = vpack.c.bf16 %v1362_v40, %v1361_v39  ;;  %v2232_v45 = vpop.f32.mrb[36].mxu1 }
 0x1cc   : > { %v1131_v46 = vadd.f32 %v2232_v45, %v2711_v42  ;;  %v1122_v47 = vpop.f32.mrb[37].mxu1 }
 0x1cd   : > { %v1123_v48 = vadd.f32 %v2711_v42, %v1122_v47  ;;  %v2233_v49 = vpop.f32.mrb[38].mxu1  ;;  %2306 = vmatprep.mubr.bf16.mxu0 %v1425_v44 }
 0x1ce   : > { %v1134_v50 = vadd.f32 %v2233_v49, %v2711_v42  ;;  %v1125_v51 = vpop.f32.mrb[39].mxu1  ;;  %2307 = vmatmul.mubr.bf16.vlgmr.msra.gmra.mrb[32].mxu0 %v1426_v41  ;;  %v1367_v53 = vmax.f32 %v1131_v46, 0.0 }
 0x1cf   : > { %v1126_v52 = vadd.f32 %v2711_v42, %v1125_v51  ;;  %v1365_v55 = vmax.f32 %v1123_v48, 0.0 }
 0x1d0   : > { %v1368_v54 = vmax.f32 %v1134_v50, 0.0 }
 0x1d1   : > { %v1366_v56 = vmax.f32 %v1126_v52, 0.0 }
 0x1d2   : > { %v1428_v57 = vpack.c.bf16 %v1368_v54, %v1367_v53 }
 0x1d3   : > { %v1427_v58 = vpack.c.bf16 %v1366_v56, %v1365_v55  ;;  %v2236_v59 = vpop.f32.mrb[40].mxu1 }
 0x1d4   : > { %v1147_v60 = vadd.f32 %v2236_v59, %v2711_v42  ;;  %v1138_v61 = vpop.f32.mrb[41].mxu1 }
 0x1d5   : > { %v1139_v62 = vadd.f32 %v2711_v42, %v1138_v61  ;;  %v2237_v0 = vpop.f32.mrb[42].mxu1  ;;  %2310 = vmatprep.mubr.bf16.mxu0 %v1427_v58 }
 0x1d6   : > { %v1150_v1 = vadd.f32 %v2237_v0, %v2711_v42  ;;  %v1141_v3 = vpop.f32.mrb[43].mxu1  ;;  %2311 = vmatmul.mubr.bf16.gmra.mrb[36].mxu0 %v1428_v57  ;;  %v1371_v6 = vmax.f32 %v1147_v60, 0.0 }
 0x1d7   : > { %v1142_v5 = vadd.f32 %v2711_v42, %v1141_v3  ;;  %v1369_v9 = vmax.f32 %v1139_v62, 0.0 }
 0x1d8   : > { %v1372_v8 = vmax.f32 %v1150_v1, 0.0 }
 0x1d9   : > { %v1370_v10 = vmax.f32 %v1142_v5, 0.0 }
 0x1da   : > { %v1430_v11 = vpack.c.bf16 %v1372_v8, %v1371_v6 }
 0x1db   : > { %v1429_v12 = vpack.c.bf16 %v1370_v10, %v1369_v9  ;;  %v2240_v13 = vpop.f32.mrb[44].mxu1 }
 0x1dc   : > { %v1163_v14 = vadd.f32 %v2240_v13, %v2711_v42  ;;  %v1154_v15 = vpop.f32.mrb[45].mxu1 }
 0x1dd   : > { %v1155_v16 = vadd.f32 %v2711_v42, %v1154_v15  ;;  %v2241_v17 = vpop.f32.mrb[46].mxu1  ;;  %2314 = vmatprep.mubr.bf16.mxu0 %v1429_v12 }
 0x1de   : > { %v1166_v18 = vadd.f32 %v2241_v17, %v2711_v42  ;;  %v1157_v19 = vpop.f32.mrb[47].mxu1  ;;  %2315 = vmatmul.mubr.bf16.gmra.mrb[40].mxu0 %v1430_v11  ;;  %v1375_v21 = vmax.f32 %v1163_v14, 0.0 }
 0x1df   : > { %v1158_v20 = vadd.f32 %v2711_v42, %v1157_v19  ;;  %v1373_v23 = vmax.f32 %v1155_v16, 0.0 }
 0x1e0   : > { %v1376_v22 = vmax.f32 %v1166_v18, 0.0 }
 0x1e1   : > { %v1374_v24 = vmax.f32 %v1158_v20, 0.0 }
 0x1e2   : > { %v1432_v25 = vpack.c.bf16 %v1376_v22, %v1375_v21 }
 0x1e3   : > { %v1431_v43 = vpack.c.bf16 %v1374_v24, %v1373_v23  ;;  %v2244_v26 = vpop.f32.mrb[48].mxu1 }
 0x1e4   : > { %v1179_v27 = vadd.f32 %v2244_v26, %v2711_v42  ;;  %v1170_v28 = vpop.f32.mrb[49].mxu1 }
 0x1e5   : > { %v1171_v30 = vadd.f32 %v2711_v42, %v1170_v28  ;;  %v2245_v31 = vpop.f32.mrb[50].mxu1  ;;  %2318 = vmatprep.mubr.bf16.mxu0 %v1431_v43 }
 0x1e6   : > { %v1182_v34 = vadd.f32 %v2245_v31, %v2711_v42  ;;  %v1173_v38 = vpop.f32.mrb[51].mxu1  ;;  %2319 = vmatmul.mubr.bf16.gmra.mrb[44].mxu0 %v1432_v25  ;;  %v1379_v7 = vmax.f32 %v1179_v27, 0.0 }
 0x1e7   : > { %v1174_v4 = vadd.f32 %v2711_v42, %v1173_v38  ;;  %v1377_v35 = vmax.f32 %v1171_v30, 0.0 }
 0x1e8   : > { %v1380_v32 = vmax.f32 %v1182_v34, 0.0 }
 0x1e9   : > { %v1378_v63 = vmax.f32 %v1174_v4, 0.0 }
 0x1ea   : > { %v1434_v2 = vpack.c.bf16 %v1380_v32, %v1379_v7 }
 0x1eb   : > { %v1433_v29 = vpack.c.bf16 %v1378_v63, %v1377_v35  ;;  %v2248_v33 = vpop.f32.mrb[52].mxu1 }
 0x1ec   : > { %v1195_v36 = vadd.f32 %v2248_v33, %v2711_v42  ;;  %v1186_v37 = vpop.f32.mrb[53].mxu1 }
 0x1ed   : > { %v1187_v39 = vadd.f32 %v2711_v42, %v1186_v37  ;;  %v2249_v40 = vpop.f32.mrb[54].mxu1  ;;  %2322 = vmatprep.mubr.bf16.mxu0 %v1433_v29 }
 0x1ee   : > { %v1198_v41 = vadd.f32 %v2249_v40, %v2711_v42  ;;  %v1189_v44 = vpop.f32.mrb[55].mxu1  ;;  %2323 = vmatmul.mubr.bf16.gmra.mrb[48].mxu0 %v1434_v2  ;;  %v1383_v46 = vmax.f32 %v1195_v36, 0.0 }
 0x1ef   : > { %v1190_v45 = vadd.f32 %v2711_v42, %v1189_v44  ;;  %v1381_v48 = vmax.f32 %v1187_v39, 0.0 }
 0x1f0   : > { %v1384_v47 = vmax.f32 %v1198_v41, 0.0 }
 0x1f1   : > { %v1382_v49 = vmax.f32 %v1190_v45, 0.0 }
 0x1f2   : > { %v1436_v50 = vpack.c.bf16 %v1384_v47, %v1383_v46 }
 0x1f3   : > { %v1435_v51 = vpack.c.bf16 %v1382_v49, %v1381_v48  ;;  %v2252_v52 = vpop.f32.mrb[56].mxu1 }
 0x1f4   : > { %v1211_v53 = vadd.f32 %v2252_v52, %v2711_v42  ;;  %v1202_v54 = vpop.f32.mrb[57].mxu1 }
 0x1f5   : > { %v1203_v55 = vadd.f32 %v2711_v42, %v1202_v54  ;;  %v2253_v56 = vpop.f32.mrb[58].mxu1  ;;  %2326 = vmatprep.mubr.bf16.mxu0 %v1435_v51 }
 0x1f6   : > { %v1214_v57 = vadd.f32 %v2253_v56, %v2711_v42  ;;  %v1205_v58 = vpop.f32.mrb[59].mxu1  ;;  %2327 = vmatmul.mubr.bf16.gmra.mrb[52].mxu0 %v1436_v50  ;;  %v1387_v60 = vmax.f32 %v1211_v53, 0.0 }
 0x1f7   : > { %v1206_v59 = vadd.f32 %v2711_v42, %v1205_v58  ;;  %v1385_v62 = vmax.f32 %v1203_v55, 0.0 }
 0x1f8   : > { %v1388_v61 = vmax.f32 %v1214_v57, 0.0 }
 0x1f9   : > { %v1386_v0 = vmax.f32 %v1206_v59, 0.0 }
 0x1fa   : > { %v1438_v1 = vpack.c.bf16 %v1388_v61, %v1387_v60 }
 0x1fb   : > { %v1437_v3 = vpack.c.bf16 %v1386_v0, %v1385_v62  ;;  %v2256_v5 = vpop.f32.mrb[60].mxu1 }
 0x1fc   : > { %v1227_v6 = vadd.f32 %v2256_v5, %v2711_v42  ;;  %v1218_v8 = vpop.f32.mrb[61].mxu1 }
 0x1fd   : > { %v1219_v9 = vadd.f32 %v2711_v42, %v1218_v8  ;;  %v2257_v10 = vpop.f32.mrb[62].mxu1  ;;  %2330 = vmatprep.mubr.bf16.mxu0 %v1437_v3 }
 0x1fe   : > { %v1230_v11 = vadd.f32 %v2257_v10, %v2711_v42  ;;  %v1221_v12 = vpop.f32.mrb[63].mxu1  ;;  %2331 = vmatmul.mubr.bf16.gmra.mrb[56].mxu0 %v1438_v1  ;;  %v1391_v14 = vmax.f32 %v1227_v6, 0.0 }
 0x1ff   : > { %v1222_v13 = vadd.f32 %v2711_v42, %v1221_v12  ;;  %v1389_v16 = vmax.f32 %v1219_v9, 0.0 }
 0x200   : > { %v1392_v15 = vmax.f32 %v1230_v11, 0.0 }
 0x201   : > { %v1390_v17 = vmax.f32 %v1222_v13, 0.0 }
 0x202   : > { %v1440_v18 = vpack.c.bf16 %v1392_v15, %v1391_v14 }
 0x203   : > { %v1439_v19 = vpack.c.bf16 %v1390_v17, %v1389_v16  ;;  %v2260_v20 = vpop.f32.mrb[64].mxu1 }
 0x204   : > { %v1243_v21 = vadd.f32 %v2260_v20, %v2711_v42  ;;  %v1234_v22 = vpop.f32.mrb[65].mxu1 }
 0x205   : > { %v1235_v23 = vadd.f32 %v2711_v42, %v1234_v22  ;;  %v2261_v24 = vpop.f32.mrb[66].mxu1  ;;  %2334 = vmatprep.mubr.bf16.mxu0 %v1439_v19 }
 0x206   : > { %v1246_v25 = vadd.f32 %v2261_v24, %v2711_v42  ;;  %v1237_v43 = vpop.f32.mrb[67].mxu1  ;;  %2335 = vmatmul.mubr.bf16.gmra.mrb[60].mxu0 %v1440_v18  ;;  %v1395_v27 = vmax.f32 %v1243_v21, 0.0 }
 0x207   : > { %v1238_v26 = vadd.f32 %v2711_v42, %v1237_v43  ;;  %v1393_v30 = vmax.f32 %v1235_v23, 0.0 }
 0x208   : > { %v1396_v28 = vmax.f32 %v1246_v25, 0.0 }
 0x209   : > { %v1394_v31 = vmax.f32 %v1238_v26, 0.0 }
 0x20a   : > { %v1442_v34 = vpack.c.bf16 %v1396_v28, %v1395_v27 }
 0x20b   : > { %v1441_v38 = vpack.c.bf16 %v1394_v31, %v1393_v30  ;;  %v2264_v4 = vpop.f32.mrb[68].mxu1 }
 0x20c   : > { %v1259_v7 = vadd.f32 %v2264_v4, %v2711_v42  ;;  %v1250_v32 = vpop.f32.mrb[69].mxu1 }
 0x20d   : > { %v1251_v35 = vadd.f32 %v2711_v42, %v1250_v32  ;;  %v2265_v63 = vpop.f32.mrb[70].mxu1  ;;  %2338 = vmatprep.mubr.bf16.mxu0 %v1441_v38 }
 0x20e   : > { %v1262_v2 = vadd.f32 %v2265_v63, %v2711_v42  ;;  %v1253_v29 = vpop.f32.mrb[71].mxu1  ;;  %2339 = vmatmul.mubr.bf16.gmra.mrb[64].mxu0 %v1442_v34  ;;  %v1399_v36 = vmax.f32 %v1259_v7, 0.0 }
 0x20f   : > { %v1254_v33 = vadd.f32 %v2711_v42, %v1253_v29  ;;  %v1397_v39 = vmax.f32 %v1251_v35, 0.0 }
 0x210   : > { %v1400_v37 = vmax.f32 %v1262_v2, 0.0 }
 0x211   : > { %v1398_v40 = vmax.f32 %v1254_v33, 0.0 }
 0x212   : > { %v1444_v41 = vpack.c.bf16 %v1400_v37, %v1399_v36 }
 0x213   : > { %v1443_v44 = vpack.c.bf16 %v1398_v40, %v1397_v39  ;;  %v2268_v45 = vpop.f32.mrb[72].mxu1 }
 0x214   : > { %v1275_v46 = vadd.f32 %v2268_v45, %v2711_v42  ;;  %v1266_v47 = vpop.f32.mrb[73].mxu1 }
 0x215   : > { %v1267_v48 = vadd.f32 %v2711_v42, %v1266_v47  ;;  %v2269_v49 = vpop.f32.mrb[74].mxu1  ;;  %2342 = vmatprep.mubr.bf16.mxu0 %v1443_v44 }
 0x216   : > { %v1278_v50 = vadd.f32 %v2269_v49, %v2711_v42  ;;  %v1269_v51 = vpop.f32.mrb[75].mxu1  ;;  %2343 = vmatmul.mubr.bf16.gmra.mrb[68].mxu0 %v1444_v41  ;;  %v1403_v53 = vmax.f32 %v1275_v46, 0.0 }
 0x217   : > { %v1270_v52 = vadd.f32 %v2711_v42, %v1269_v51  ;;  %v1401_v55 = vmax.f32 %v1267_v48, 0.0 }
 0x218   : > { %v1404_v54 = vmax.f32 %v1278_v50, 0.0 }
 0x219   : > { %v1402_v56 = vmax.f32 %v1270_v52, 0.0 }
 0x21a   : > { %v1446_v57 = vpack.c.bf16 %v1404_v54, %v1403_v53 }
 0x21b   : > { %v1445_v58 = vpack.c.bf16 %v1402_v56, %v1401_v55  ;;  %v2272_v59 = vpop.f32.mrb[76].mxu1 }
 0x21c   : > { %v1291_v60 = vadd.f32 %v2272_v59, %v2711_v42  ;;  %v1282_v61 = vpop.f32.mrb[77].mxu1 }
 0x21d   : > { %v1283_v62 = vadd.f32 %v2711_v42, %v1282_v61  ;;  %v2273_v0 = vpop.f32.mrb[78].mxu1  ;;  %2346 = vmatprep.mubr.bf16.mxu0 %v1445_v58 }
 0x21e   : > { %v1294_v1 = vadd.f32 %v2273_v0, %v2711_v42  ;;  %v1285_v3 = vpop.f32.mrb[79].mxu1  ;;  %2347 = vmatmul.mubr.bf16.gmra.mrb[72].mxu0 %v1446_v57  ;;  %v1407_v6 = vmax.f32 %v1291_v60, 0.0 }
 0x21f   : > { %v1286_v5 = vadd.f32 %v2711_v42, %v1285_v3  ;;  %v1405_v9 = vmax.f32 %v1283_v62, 0.0 }
 0x220   : > { %v1408_v8 = vmax.f32 %v1294_v1, 0.0 }
 0x221   : > { %v1406_v10 = vmax.f32 %v1286_v5, 0.0  ;;  %v2781_v5 = vld [vmem:[%s2925_s6] ss:$0 sm:$0xff] }
 0x222   : > { %v1448_v11 = vpack.c.bf16 %v1408_v8, %v1407_v6 }
 0x223   : > { %v1447_v12 = vpack.c.bf16 %v1406_v10, %v1405_v9  ;;  %v2276_v13 = vpop.f32.mrb[80].mxu1 }
 0x224   : > { %v1307_v14 = vadd.f32 %v2276_v13, %v2711_v42  ;;  %v1298_v15 = vpop.f32.mrb[81].mxu1 }
 0x225   : > { %v1299_v16 = vadd.f32 %v2711_v42, %v1298_v15  ;;  %v2277_v17 = vpop.f32.mrb[82].mxu1  ;;  %2350 = vmatprep.mubr.bf16.mxu0 %v1447_v12 }
 0x226   : > { %v1310_v18 = vadd.f32 %v2277_v17, %v2711_v42  ;;  %v1301_v19 = vpop.f32.mrb[83].mxu1  ;;  %2351 = vmatmul.mubr.bf16.gmra.mrb[76].mxu0 %v1448_v11  ;;  %v1411_v21 = vmax.f32 %v1307_v14, 0.0 }
 0x227   : > { %v1302_v20 = vadd.f32 %v2711_v42, %v1301_v19  ;;  %v1409_v23 = vmax.f32 %v1299_v16, 0.0 }
 0x228   : > { %v1412_v22 = vmax.f32 %v1310_v18, 0.0 }
 0x229   : > { %v1410_v24 = vmax.f32 %v1302_v20, 0.0 }
 0x22a   : > { %v1450_v25 = vpack.c.bf16 %v1412_v22, %v1411_v21 }
 0x22b   : > { %v1449_v43 = vpack.c.bf16 %v1410_v24, %v1409_v23  ;;  %v2280_v26 = vpop.f32.mrb[84].mxu1 }
 0x22c   : > { %v1323_v27 = vadd.f32 %v2280_v26, %v2711_v42  ;;  %v1314_v28 = vpop.f32.mrb[85].mxu1 }
 0x22d   : > { %v1315_v30 = vadd.f32 %v2711_v42, %v1314_v28  ;;  %v2281_v31 = vpop.f32.mrb[86].mxu1  ;;  %2354 = vmatprep.mubr.bf16.mxu0 %v1449_v43 }
 0x22e   : > { %v1326_v34 = vadd.f32 %v2281_v31, %v2711_v42  ;;  %v1317_v38 = vpop.f32.mrb[87].mxu1  ;;  %2355 = vmatmul.mubr.bf16.gmra.mrb[80].mxu0 %v1450_v25  ;;  %v1415_v7 = vmax.f32 %v1323_v27, 0.0 }
 0x22f   : > { %v1318_v4 = vadd.f32 %v2711_v42, %v1317_v38  ;;  %v1413_v35 = vmax.f32 %v1315_v30, 0.0 }
 0x230   : > { %v1416_v32 = vmax.f32 %v1326_v34, 0.0 }
 0x231   : > { %v1414_v63 = vmax.f32 %v1318_v4, 0.0 }
 0x232   : > { %v1452_v2 = vpack.c.bf16 %v1416_v32, %v1415_v7 }
 0x233   : > { %v1451_v29 = vpack.c.bf16 %v1414_v63, %v1413_v35  ;;  %v2284_v33 = vpop.f32.mrb[88].mxu1 }
 0x234   : > { %v1339_v36 = vadd.f32 %v2284_v33, %v2711_v42  ;;  %v1330_v37 = vpop.f32.mrb[89].mxu1 }
 0x235   : > { %v1331_v39 = vadd.f32 %v2711_v42, %v1330_v37  ;;  %v2285_v40 = vpop.f32.mrb[90].mxu1  ;;  %2358 = vmatprep.mubr.bf16.mxu0 %v1451_v29 }
 0x236   : > { %v1342_v41 = vadd.f32 %v2285_v40, %v2711_v42  ;;  %v1333_v44 = vpop.f32.mrb[91].mxu1  ;;  %2359 = vmatmul.mubr.bf16.gmra.mrb[84].mxu0 %v1452_v2  ;;  %v1419_v46 = vmax.f32 %v1339_v36, 0.0 }
 0x237   : > { %v1334_v45 = vadd.f32 %v2711_v42, %v1333_v44  ;;  %v1417_v48 = vmax.f32 %v1331_v39, 0.0 }
 0x238   : > { %v1420_v47 = vmax.f32 %v1342_v41, 0.0 }
 0x239   : > { %v1418_v49 = vmax.f32 %v1334_v45, 0.0 }
 0x23a   : > { %v1454_v50 = vpack.c.bf16 %v1420_v47, %v1419_v46 }
 0x23b   : > { %v1453_v51 = vpack.c.bf16 %v1418_v49, %v1417_v48  ;;  %v2288_v52 = vpop.f32.mrb[92].mxu1 }
 0x23c   : > { %v1355_v53 = vadd.f32 %v2288_v52, %v2711_v42  ;;  %v1346_v54 = vpop.f32.mrb[93].mxu1 }
 0x23d   : > { %v1347_v55 = vadd.f32 %v2711_v42, %v1346_v54  ;;  %v2289_v56 = vpop.f32.mrb[94].mxu1  ;;  %2362 = vmatprep.mubr.bf16.mxu0 %v1453_v51 }
 0x23e   : > { %v1358_v57 = vadd.f32 %v2289_v56, %v2711_v42  ;;  %v1349_v58 = vpop.f32.mrb[95].mxu1  ;;  %2363 = vmatmul.mubr.bf16.gmra.mrb[88].mxu0 %v1454_v50  ;;  %v1423_v60 = vmax.f32 %v1355_v53, 0.0 }
 0x23f   : > { %v1350_v59 = vadd.f32 %v2711_v42, %v1349_v58  ;;  %v1421_v62 = vmax.f32 %v1347_v55, 0.0 }
 0x240   : > { %v1424_v61 = vmax.f32 %v1358_v57, 0.0 }
 0x241   : > { %v1422_v0 = vmax.f32 %v1350_v59, 0.0 }
 0x242   : > { %v1456_v1 = vpack.c.bf16 %v1424_v61, %v1423_v60 }
 0x243   : > { %v1455_v3 = vpack.c.bf16 %v1422_v0, %v1421_v62 }
 0x245   : > { %2366 = vmatprep.mubr.bf16.mxu0 %v1455_v3 }
 0x246   : > { %2367 = vmatmul.mubr.bf16.gmra.mrb[92].mxu0 %v1456_v1 }
 0x2a1   : > { %v2308_v42 = vpop.f32.mrb[32].mxu0 }
 0x2a2   : > { %v1571_v6 = vadd.f32 %v2308_v42, %v2781_v5  ;;  %v1562_v8 = vpop.f32.mrb[33].mxu0 }
 0x2a3   : > { %v1563_v9 = vadd.f32 %v2781_v5, %v1562_v8  ;;  %v2309_v10 = vpop.f32.mrb[34].mxu0 }
 0x2a4   : > { %1819 = vst [vmem:[%s2786_s9 + $0x10] sm:$0xff] %v1571_v6  ;;  %v1574_v11 = vadd.f32 %v2309_v10, %v2781_v5  ;;  %v1565_v12 = vpop.f32.mrb[35].mxu0 }
 0x2a5   : > { %1817 = vst [vmem:[%s2786_s9] sm:$0xff] %v1563_v9  ;;  %v1566_v13 = vadd.f32 %v2781_v5, %v1565_v12 }
 0x2a6   : > { %1820 = vst [vmem:[%s2786_s9 + $0x18] sm:$0xff] %v1574_v11 }
 0x2a7   : > { %1818 = vst [vmem:[%s2786_s9 + $0x8] sm:$0xff] %v1566_v13 }
 0x2a9   : > { %v2312_v14 = vpop.f32.mrb[36].mxu0 }
 0x2aa   : > { %v1587_v15 = vadd.f32 %v2312_v14, %v2781_v5  ;;  %v1578_v16 = vpop.f32.mrb[37].mxu0 }
 0x2ab   : > { %v1579_v17 = vadd.f32 %v2781_v5, %v1578_v16  ;;  %v2313_v18 = vpop.f32.mrb[38].mxu0 }
 0x2ac   : > { %1823 = vst [vmem:[%s2786_s9 + $0x30] sm:$0xff] %v1587_v15  ;;  %v1590_v19 = vadd.f32 %v2313_v18, %v2781_v5  ;;  %v1581_v20 = vpop.f32.mrb[39].mxu0 }
 0x2ad   : > { %1821 = vst [vmem:[%s2786_s9 + $0x20] sm:$0xff] %v1579_v17  ;;  %v1582_v21 = vadd.f32 %v2781_v5, %v1581_v20 }
 0x2ae   : > { %1824 = vst [vmem:[%s2786_s9 + $0x38] sm:$0xff] %v1590_v19 }
 0x2af   : > { %1822 = vst [vmem:[%s2786_s9 + $0x28] sm:$0xff] %v1582_v21 }
 0x2b1   : > { %v2316_v22 = vpop.f32.mrb[40].mxu0 }
 0x2b2   : > { %v1603_v23 = vadd.f32 %v2316_v22, %v2781_v5  ;;  %v1594_v24 = vpop.f32.mrb[41].mxu0 }
 0x2b3   : > { %v1595_v25 = vadd.f32 %v2781_v5, %v1594_v24  ;;  %v2317_v43 = vpop.f32.mrb[42].mxu0 }
 0x2b4   : > { %1827 = vst [vmem:[%s2786_s9 + $0x50] sm:$0xff] %v1603_v23  ;;  %v1606_v26 = vadd.f32 %v2317_v43, %v2781_v5  ;;  %v1597_v27 = vpop.f32.mrb[43].mxu0 }
 0x2b5   : > { %1825 = vst [vmem:[%s2786_s9 + $0x40] sm:$0xff] %v1595_v25  ;;  %v1598_v28 = vadd.f32 %v2781_v5, %v1597_v27 }
 0x2b6   : > { %1828 = vst [vmem:[%s2786_s9 + $0x58] sm:$0xff] %v1606_v26 }
 0x2b7   : > { %1826 = vst [vmem:[%s2786_s9 + $0x48] sm:$0xff] %v1598_v28 }
 0x2b9   : > { %v2320_v30 = vpop.f32.mrb[44].mxu0 }
 0x2ba   : > { %v1619_v31 = vadd.f32 %v2320_v30, %v2781_v5  ;;  %v1610_v34 = vpop.f32.mrb[45].mxu0 }
 0x2bb   : > { %v1611_v38 = vadd.f32 %v2781_v5, %v1610_v34  ;;  %v2321_v4 = vpop.f32.mrb[46].mxu0 }
 0x2bc   : > { %1831 = vst [vmem:[%s2786_s9 + $0x70] sm:$0xff] %v1619_v31  ;;  %v1622_v7 = vadd.f32 %v2321_v4, %v2781_v5  ;;  %v1613_v32 = vpop.f32.mrb[47].mxu0 }
 0x2bd   : > { %1829 = vst [vmem:[%s2786_s9 + $0x60] sm:$0xff] %v1611_v38  ;;  %v1614_v35 = vadd.f32 %v2781_v5, %v1613_v32 }
 0x2be   : > { %1832 = vst [vmem:[%s2786_s9 + $0x78] sm:$0xff] %v1622_v7 }
 0x2bf   : > { %1830 = vst [vmem:[%s2786_s9 + $0x68] sm:$0xff] %v1614_v35 }
 0x2c1   : > { %v2324_v63 = vpop.f32.mrb[48].mxu0 }
 0x2c2   : > { %v1635_v2 = vadd.f32 %v2324_v63, %v2781_v5  ;;  %v1626_v29 = vpop.f32.mrb[49].mxu0 }
 0x2c3   : > { %v1627_v33 = vadd.f32 %v2781_v5, %v1626_v29  ;;  %v2325_v36 = vpop.f32.mrb[50].mxu0 }
 0x2c4   : > { %1835 = vst [vmem:[%s2786_s9 + $0x90] sm:$0xff] %v1635_v2  ;;  %v1638_v37 = vadd.f32 %v2325_v36, %v2781_v5  ;;  %v1629_v39 = vpop.f32.mrb[51].mxu0 }
 0x2c5   : > { %1833 = vst [vmem:[%s2786_s9 + $0x80] sm:$0xff] %v1627_v33  ;;  %v1630_v40 = vadd.f32 %v2781_v5, %v1629_v39 }
 0x2c6   : > { %1836 = vst [vmem:[%s2786_s9 + $0x98] sm:$0xff] %v1638_v37 }
 0x2c7   : > { %1834 = vst [vmem:[%s2786_s9 + $0x88] sm:$0xff] %v1630_v40 }
 0x2c9   : > { %v2328_v41 = vpop.f32.mrb[52].mxu0 }
 0x2ca   : > { %v1651_v44 = vadd.f32 %v2328_v41, %v2781_v5  ;;  %v1642_v45 = vpop.f32.mrb[53].mxu0 }
 0x2cb   : > { %v1643_v46 = vadd.f32 %v2781_v5, %v1642_v45  ;;  %v2329_v47 = vpop.f32.mrb[54].mxu0 }
 0x2cc   : > { %1839 = vst [vmem:[%s2786_s9 + $0xb0] sm:$0xff] %v1651_v44  ;;  %v1654_v48 = vadd.f32 %v2329_v47, %v2781_v5  ;;  %v1645_v49 = vpop.f32.mrb[55].mxu0 }
 0x2cd   : > { %1837 = vst [vmem:[%s2786_s9 + $0xa0] sm:$0xff] %v1643_v46  ;;  %v1646_v50 = vadd.f32 %v2781_v5, %v1645_v49 }
 0x2ce   : > { %1840 = vst [vmem:[%s2786_s9 + $0xb8] sm:$0xff] %v1654_v48 }
 0x2cf   : > { %1838 = vst [vmem:[%s2786_s9 + $0xa8] sm:$0xff] %v1646_v50 }
 0x2d1   : > { %v2332_v51 = vpop.f32.mrb[56].mxu0 }
 0x2d2   : > { %v1667_v52 = vadd.f32 %v2332_v51, %v2781_v5  ;;  %v1658_v53 = vpop.f32.mrb[57].mxu0 }
 0x2d3   : > { %v1659_v54 = vadd.f32 %v2781_v5, %v1658_v53  ;;  %v2333_v55 = vpop.f32.mrb[58].mxu0 }
 0x2d4   : > { %1843 = vst [vmem:[%s2786_s9 + $0xd0] sm:$0xff] %v1667_v52  ;;  %v1670_v56 = vadd.f32 %v2333_v55, %v2781_v5  ;;  %v1661_v57 = vpop.f32.mrb[59].mxu0 }
 0x2d5   : > { %1841 = vst [vmem:[%s2786_s9 + $0xc0] sm:$0xff] %v1659_v54  ;;  %v1662_v58 = vadd.f32 %v2781_v5, %v1661_v57 }
 0x2d6   : > { %1844 = vst [vmem:[%s2786_s9 + $0xd8] sm:$0xff] %v1670_v56 }
 0x2d7   : > { %1842 = vst [vmem:[%s2786_s9 + $0xc8] sm:$0xff] %v1662_v58 }
 0x2d9   : > { %v2336_v59 = vpop.f32.mrb[60].mxu0 }
 0x2da   : > { %v1683_v60 = vadd.f32 %v2336_v59, %v2781_v5  ;;  %v1674_v61 = vpop.f32.mrb[61].mxu0 }
 0x2db   : > { %v1675_v62 = vadd.f32 %v2781_v5, %v1674_v61  ;;  %v2337_v0 = vpop.f32.mrb[62].mxu0 }
 0x2dc   : > { %1847 = vst [vmem:[%s2786_s9 + $0xf0] sm:$0xff] %v1683_v60  ;;  %v1686_v1 = vadd.f32 %v2337_v0, %v2781_v5  ;;  %v1677_v3 = vpop.f32.mrb[63].mxu0 }
 0x2dd   : > { %1845 = vst [vmem:[%s2786_s9 + $0xe0] sm:$0xff] %v1675_v62  ;;  %v1678_v42 = vadd.f32 %v2781_v5, %v1677_v3 }
 0x2de   : > { %1848 = vst [vmem:[%s2786_s9 + $0xf8] sm:$0xff] %v1686_v1 }
 0x2df   : > { %1846 = vst [vmem:[%s2786_s9 + $0xe8] sm:$0xff] %v1678_v42 }
 0x2e1   : > { %v2340_v6 = vpop.f32.mrb[64].mxu0 }
 0x2e2   : > { %v1699_v8 = vadd.f32 %v2340_v6, %v2781_v5  ;;  %v1690_v9 = vpop.f32.mrb[65].mxu0 }
 0x2e3   : > { %v1691_v10 = vadd.f32 %v2781_v5, %v1690_v9  ;;  %v2341_v11 = vpop.f32.mrb[66].mxu0 }
 0x2e4   : > { %1851 = vst [vmem:[%s2786_s9 + $0x110] sm:$0xff] %v1699_v8  ;;  %v1702_v12 = vadd.f32 %v2341_v11, %v2781_v5  ;;  %v1693_v13 = vpop.f32.mrb[67].mxu0 }
 0x2e5   : > { %1849 = vst [vmem:[%s2786_s9 + $0x100] sm:$0xff] %v1691_v10  ;;  %v1694_v14 = vadd.f32 %v2781_v5, %v1693_v13 }
 0x2e6   : > { %1852 = vst [vmem:[%s2786_s9 + $0x118] sm:$0xff] %v1702_v12 }
 0x2e7   : > { %1850 = vst [vmem:[%s2786_s9 + $0x108] sm:$0xff] %v1694_v14 }
 0x2e9   : > { %v2344_v15 = vpop.f32.mrb[68].mxu0 }
 0x2ea   : > { %v1715_v16 = vadd.f32 %v2344_v15, %v2781_v5  ;;  %v1706_v17 = vpop.f32.mrb[69].mxu0 }
 0x2eb   : > { %v1707_v18 = vadd.f32 %v2781_v5, %v1706_v17  ;;  %v2345_v19 = vpop.f32.mrb[70].mxu0 }
 0x2ec   : > { %1855 = vst [vmem:[%s2786_s9 + $0x130] sm:$0xff] %v1715_v16  ;;  %v1718_v20 = vadd.f32 %v2345_v19, %v2781_v5  ;;  %v1709_v21 = vpop.f32.mrb[71].mxu0 }
 0x2ed   : > { %1853 = vst [vmem:[%s2786_s9 + $0x120] sm:$0xff] %v1707_v18  ;;  %v1710_v22 = vadd.f32 %v2781_v5, %v1709_v21 }
 0x2ee   : > { %1856 = vst [vmem:[%s2786_s9 + $0x138] sm:$0xff] %v1718_v20 }
 0x2ef   : > { %1854 = vst [vmem:[%s2786_s9 + $0x128] sm:$0xff] %v1710_v22 }
 0x2f1   : > { %v2348_v23 = vpop.f32.mrb[72].mxu0 }
 0x2f2   : > { %v1731_v24 = vadd.f32 %v2348_v23, %v2781_v5  ;;  %v1722_v25 = vpop.f32.mrb[73].mxu0 }
 0x2f3   : > { %v1723_v43 = vadd.f32 %v2781_v5, %v1722_v25  ;;  %v2349_v26 = vpop.f32.mrb[74].mxu0 }
 0x2f4   : > { %1859 = vst [vmem:[%s2786_s9 + $0x150] sm:$0xff] %v1731_v24  ;;  %v1734_v27 = vadd.f32 %v2349_v26, %v2781_v5  ;;  %v1725_v28 = vpop.f32.mrb[75].mxu0 }
 0x2f5   : > { %1857 = vst [vmem:[%s2786_s9 + $0x140] sm:$0xff] %v1723_v43  ;;  %v1726_v30 = vadd.f32 %v2781_v5, %v1725_v28 }
 0x2f6   : > { %1860 = vst [vmem:[%s2786_s9 + $0x158] sm:$0xff] %v1734_v27 }
 0x2f7   : > { %1858 = vst [vmem:[%s2786_s9 + $0x148] sm:$0xff] %v1726_v30 }
 0x2f9   : > { %v2352_v31 = vpop.f32.mrb[76].mxu0 }
 0x2fa   : > { %v1747_v34 = vadd.f32 %v2352_v31, %v2781_v5  ;;  %v1738_v38 = vpop.f32.mrb[77].mxu0 }
 0x2fb   : > { %v1739_v4 = vadd.f32 %v2781_v5, %v1738_v38  ;;  %v2353_v7 = vpop.f32.mrb[78].mxu0 }
 0x2fc   : > { %1863 = vst [vmem:[%s2786_s9 + $0x170] sm:$0xff] %v1747_v34  ;;  %v1750_v32 = vadd.f32 %v2353_v7, %v2781_v5  ;;  %v1741_v35 = vpop.f32.mrb[79].mxu0 }
 0x2fd   : > { %1861 = vst [vmem:[%s2786_s9 + $0x160] sm:$0xff] %v1739_v4  ;;  %v1742_v63 = vadd.f32 %v2781_v5, %v1741_v35 }
 0x2fe   : > { %1864 = vst [vmem:[%s2786_s9 + $0x178] sm:$0xff] %v1750_v32 }
 0x2ff   : > { %1862 = vst [vmem:[%s2786_s9 + $0x168] sm:$0xff] %v1742_v63 }
 0x301   : > { %v2356_v2 = vpop.f32.mrb[80].mxu0 }
 0x302   : > { %v1763_v29 = vadd.f32 %v2356_v2, %v2781_v5  ;;  %v1754_v33 = vpop.f32.mrb[81].mxu0 }
 0x303   : > { %v1755_v36 = vadd.f32 %v2781_v5, %v1754_v33  ;;  %v2357_v37 = vpop.f32.mrb[82].mxu0 }
 0x304   : > { %1867 = vst [vmem:[%s2786_s9 + $0x190] sm:$0xff] %v1763_v29  ;;  %v1766_v39 = vadd.f32 %v2357_v37, %v2781_v5  ;;  %v1757_v40 = vpop.f32.mrb[83].mxu0 }
 0x305   : > { %1865 = vst [vmem:[%s2786_s9 + $0x180] sm:$0xff] %v1755_v36  ;;  %v1758_v41 = vadd.f32 %v2781_v5, %v1757_v40 }
 0x306   : > { %1868 = vst [vmem:[%s2786_s9 + $0x198] sm:$0xff] %v1766_v39 }
 0x307   : > { %1866 = vst [vmem:[%s2786_s9 + $0x188] sm:$0xff] %v1758_v41 }
 0x309   : > { %v2360_v44 = vpop.f32.mrb[84].mxu0 }
 0x30a   : > { %v1779_v45 = vadd.f32 %v2360_v44, %v2781_v5  ;;  %v1770_v46 = vpop.f32.mrb[85].mxu0 }
 0x30b   : > { %v1771_v47 = vadd.f32 %v2781_v5, %v1770_v46  ;;  %v2361_v48 = vpop.f32.mrb[86].mxu0 }
 0x30c   : > { %1871 = vst [vmem:[%s2786_s9 + $0x1b0] sm:$0xff] %v1779_v45  ;;  %v1782_v49 = vadd.f32 %v2361_v48, %v2781_v5  ;;  %v1773_v50 = vpop.f32.mrb[87].mxu0 }
 0x30d   : > { %1869 = vst [vmem:[%s2786_s9 + $0x1a0] sm:$0xff] %v1771_v47  ;;  %v1774_v51 = vadd.f32 %v2781_v5, %v1773_v50 }
 0x30e   : > { %1872 = vst [vmem:[%s2786_s9 + $0x1b8] sm:$0xff] %v1782_v49 }
 0x30f   : > { %1870 = vst [vmem:[%s2786_s9 + $0x1a8] sm:$0xff] %v1774_v51 }
 0x311   : > { %v2364_v52 = vpop.f32.mrb[88].mxu0 }
 0x312   : > { %v1795_v53 = vadd.f32 %v2364_v52, %v2781_v5  ;;  %v1786_v54 = vpop.f32.mrb[89].mxu0 }
 0x313   : > { %v1787_v55 = vadd.f32 %v2781_v5, %v1786_v54  ;;  %v2365_v56 = vpop.f32.mrb[90].mxu0 }
 0x314   : > { %1875 = vst [vmem:[%s2786_s9 + $0x1d0] sm:$0xff] %v1795_v53  ;;  %v1798_v57 = vadd.f32 %v2365_v56, %v2781_v5  ;;  %v1789_v58 = vpop.f32.mrb[91].mxu0 }
 0x315   : > { %1873 = vst [vmem:[%s2786_s9 + $0x1c0] sm:$0xff] %v1787_v55  ;;  %v1790_v59 = vadd.f32 %v2781_v5, %v1789_v58 }
 0x316   : > { %1876 = vst [vmem:[%s2786_s9 + $0x1d8] sm:$0xff] %v1798_v57 }
 0x317   : > { %1874 = vst [vmem:[%s2786_s9 + $0x1c8] sm:$0xff] %v1790_v59 }
 0x319   : > { %v2368_v60 = vpop.f32.mrb[92].mxu0 }
 0x31a   : > { %v1811_v61 = vadd.f32 %v2368_v60, %v2781_v5  ;;  %v1802_v62 = vpop.f32.mrb[93].mxu0 }
 0x31b   : > { %v1803_v0 = vadd.f32 %v2781_v5, %v1802_v62  ;;  %v2369_v1 = vpop.f32.mrb[94].mxu0 }
 0x31c   : > { %1879 = vst [vmem:[%s2786_s9 + $0x1f0] sm:$0xff] %v1811_v61  ;;  %v1814_v3 = vadd.f32 %v2369_v1, %v2781_v5  ;;  %v1805_v42 = vpop.f32.mrb[95].mxu0 }
 0x31d   : > { %1877 = vst [vmem:[%s2786_s9 + $0x1e0] sm:$0xff] %v1803_v0  ;;  %v1806_v6 = vadd.f32 %v2781_v5, %v1805_v42 }
 0x31e   : > { %1880 = vst [vmem:[%s2786_s9 + $0x1f8] sm:$0xff] %v1814_v3 }
 0x31f   : > { %1878 = vst [vmem:[%s2786_s9 + $0x1e8] sm:$0xff] %v1806_v6 }
 0x320 PF: > { %s17_s24 = sadd.s32 1, %s2436_s24  }
 0x321   : > { %p14_p4 = scmp.ge.s32.totalorder %s17_s24, 4  }
 0x323   :  { %16 = sbr.rel (!%p14_p4) target bundleno = 1 (0x1), region = 78 }

</bundles_post_ra>
